<compile_context>
chip_gen: v6e
topology: v6e:2x2x1
jax: 0.10.0
libtpu: 0.0.40
codegen_flags: <defaults>
</compile_context>

<pallas_src>
import jax
import jax.numpy as jnp
from jax.experimental import pallas as pl
from jax.experimental.pallas import tpu as pltpu


def _round_up(x, m):
    return (x + m - 1) // m * m


def mf_fused_kernel(uidx_ref, iidx_ref, pu_ref, pi_ref, b1_ref,
                    w2_ref, b2_ref, w3_ref, b3_ref, o_ref):
    tile_b = o_ref.shape[1]
    nu = pu_ref.shape[1]
    ni = pi_ref.shape[1]

    uidx = uidx_ref[...]                                    # (1, TILE_B) int32
    iidx = iidx_ref[...]

    # In-kernel embedding gather as a one-hot matmul against the fc1-folded
    # tables (exact: a single 0/1 entry per column, bf16 values, f32 accum).
    # TODO(synk): for large NU/NI, replace the one-hot gather with a
    # scalar-prefetched per-row DMA gather (PrefetchScalarGridSpec +
    # memory_space=pl.ANY + make_async_copy) — essential on v7x's 64 MiB VMEM.
    iota_u = jax.lax.broadcasted_iota(jnp.int32, (nu, tile_b), 0)
    iota_i = jax.lax.broadcasted_iota(jnp.int32, (ni, tile_b), 0)
    onehot_u = (iota_u == uidx).astype(jnp.bfloat16)        # (NU_pad, TILE_B)
    onehot_i = (iota_i == iidx).astype(jnp.bfloat16)        # (NI_pad, TILE_B)

    # fc1 (folded into the tables) + bias + ReLU. Dropout is identity in eval.
    h1 = (jnp.dot(pu_ref[...], onehot_u, preferred_element_type=jnp.float32)
          + jnp.dot(pi_ref[...], onehot_i, preferred_element_type=jnp.float32)
          + b1_ref[...])                                    # (H, TILE_B) f32
    h1 = jnp.maximum(h1, 0.0)

    # fc2 + ReLU (bf16 operands, f32 accumulate).
    h2 = jnp.dot(w2_ref[...], h1.astype(jnp.bfloat16),
                 preferred_element_type=jnp.float32) + b2_ref[...]
    h2 = jnp.maximum(h2, 0.0)                               # (H2, TILE_B) f32

    # fc3 as VPU multiply + sublane reduce (avoids an N=1 MXU pass), then
    # sigmoid * 5.0 in f32, stored lane-dense.
    logits = jnp.sum(h2 * w3_ref[...], axis=0, keepdims=True) + b3_ref[...]
    o_ref[...] = (jax.nn.sigmoid(logits) * 5.0).astype(o_ref.dtype)


def init_params(key, num_users, num_items, embedding_dim=64, hidden_dim=32):
    ks = jax.random.split(key, 8)
    D, H = embedding_dim, hidden_dim
    H2 = hidden_dim // 2
    d_in = 2 * D
    nu_pad = _round_up(num_users, 8)
    ni_pad = _round_up(num_items, 8)

    def unif(k, shape, bound):
        return jax.random.uniform(k, shape, jnp.float32, -bound, bound)

    ue = jax.random.normal(ks[0], (num_users, D), jnp.float32)   # nn.Embedding init
    ie = jax.random.normal(ks[1], (num_items, D), jnp.float32)

    b1w = 1.0 / jnp.sqrt(d_in)
    b2w = 1.0 / jnp.sqrt(H)
    b3w = 1.0 / jnp.sqrt(H2)
    w1 = unif(ks[2], (H, d_in), b1w)          # torch layout (out, in)
    b1 = unif(ks[3], (H, 1), b1w)
    w2 = unif(ks[4], (H2, H), b2w)
    b2 = unif(ks[5], (H2, 1), b2w)
    w3 = unif(ks[6], (1, H2), b3w)
    b3 = unif(ks[7], (1, 1), b3w)

    # Fold fc1 into the embedding tables (exactly linear):
    #   fc1(concat(E_u[u], E_i[i])) = (W1u @ E_u^T)[:, u] + (W1i @ E_i^T)[:, i] + b1
    pu = jnp.zeros((H, nu_pad), jnp.float32).at[:, :num_users].set(w1[:, :D] @ ue.T)
    pi = jnp.zeros((H, ni_pad), jnp.float32).at[:, :num_items].set(w1[:, D:] @ ie.T)

    return {
        "pu": pu.astype(jnp.bfloat16),                  # (H, NU_pad)  bf16
        "pi": pi.astype(jnp.bfloat16),                  # (H, NI_pad)  bf16
        "b1": b1,                                       # (H, 1)  f32
        "w2": w2.astype(jnp.bfloat16),                  # (H2, H) bf16
        "b2": b2,                                       # (H2, 1) f32
        "w3": w3.T,                                     # (H2, 1) f32
        "b3": b3,                                       # (1, 1)  f32
    }


def _default_vmem_limit_bytes():
    # ~60% of the chip's VMEM (v7x: ~38 MiB of 64; v5e/v6e: ~77 MiB of 128),
    # capped at 96 MiB, with a conservative fallback if the query fails.
    try:
        cap = int(pltpu.get_tpu_info().vmem_capacity_bytes)
    except Exception:
        cap = 64 * 1024 * 1024
    return min(int(cap * 0.6), 96 * 1024 * 1024)


def enhanced_mf_forward(params, user, item, *, tile_b=8192):
    B = int(user.shape[0])

    # Keep >= 2 grid steps for large batches so the "parallel" batch axis can
    # shard across v7x's two TensorCores; clamp tile_b down for tiny batches.
    if B >= 2048 and pl.cdiv(B, tile_b) < 2:
        tile_b = _round_up(pl.cdiv(B, 2), 128)
    tile_b = max(128, _round_up(min(tile_b, _round_up(B, 128)), 128))

    num_tiles = int(pl.cdiv(B, tile_b))
    b_pad = num_tiles * tile_b

    # Padded batch lanes reuse index 0 (valid); they're sliced off at the end.
    uidx = jnp.zeros((1, b_pad), jnp.int32).at[0, :B].set(user.astype(jnp.int32))
    iidx = jnp.zeros((1, b_pad), jnp.int32).at[0, :B].set(item.astype(jnp.int32))

    pu, pi = params["pu"], params["pi"]
    b1, w2, b2 = params["b1"], params["w2"], params["b2"]
    w3, b3 = params["w3"], params["b3"]

    H = pu.shape[0]
    H2 = w2.shape[0]
    NU, NI = pu.shape[1], pi.shape[1]

    idx_spec = pl.BlockSpec((1, tile_b), lambda i: (0, i))

    def const(arr):
        # Full-array block, constant index_map: VMEM-resident across all steps.
        # TODO(synk): add pipeline_mode=pl.Buffered(1) to single-buffer these
        # constant blocks once that path is verified; negligible at toy sizes.
        nd = arr.ndim
        return pl.BlockSpec(arr.shape, lambda i, _nd=nd: (0,) * _nd)

    flops = 2 * b_pad * (H * NU + H * NI + H * H2 + H2)
    bytes_accessed = (3 * b_pad * 4
                      + (pu.size + pi.size + w2.size) * 2
                      + (b1.size + b2.size + w3.size + b3.size) * 4)

    out = pl.pallas_call(
        mf_fused_kernel,
        out_shape=jax.ShapeDtypeStruct((1, b_pad), jnp.float32),
        grid=(num_tiles,),
        in_specs=[idx_spec, idx_spec,
                  const(pu), const(pi), const(b1),
                  const(w2), const(b2), const(w3), const(b3)],
        out_specs=pl.BlockSpec((1, tile_b), lambda i: (0, i)),
        compiler_params=pltpu.CompilerParams(
            dimension_semantics=("parallel",),
            vmem_limit_bytes=_default_vmem_limit_bytes()),
        cost_estimate=pl.CostEstimate(
            flops=flops, transcendentals=b_pad, bytes_accessed=bytes_accessed),
    )(uidx, iidx, pu, pi, b1, w2, b2, w3, b3)

    return out[0, :B].reshape(B, 1)


def reference_forward(params, user, item):
    # Pure-JAX reference on the same (fc1-folded, bf16-quantized) parameters.
    pu = params["pu"].astype(jnp.float32)                       # (H, NU_pad)
    pi = params["pi"].astype(jnp.float32)                       # (H, NI_pad)
    h1 = pu[:, user].T + pi[:, item].T + params["b1"][:, 0]     # (B, H)
    h1 = jnp.maximum(h1, 0.0)
    h1 = h1.astype(jnp.bfloat16).astype(jnp.float32)            # match kernel cast
    h2 = jnp.maximum(h1 @ params["w2"].astype(jnp.float32).T + params["b2"][:, 0], 0.0)
    logits = h2 @ params["w3"][:, 0] + params["b3"][0, 0]
    return (jax.nn.sigmoid(logits) * 5.0)[:, None]


if __name__ == "__main__":
    key = jax.random.PRNGKey(0)
    num_users, num_items = 10, 12
    embedding_dim, hidden_dim = 64, 32
    B, TILE_B = 384, 256          # 2 grid tiles at toy size (last tile padded)

    kp, ku, ki = jax.random.split(key, 3)
    params = init_params(kp, num_users, num_items, embedding_dim, hidden_dim)
    user = jax.random.randint(ku, (B,), 0, num_users, dtype=jnp.int32)
    item = jax.random.randint(ki, (B,), 0, num_items, dtype=jnp.int32)

    out = enhanced_mf_forward(params, user, item, tile_b=TILE_B)
    out = jax.block_until_ready(out)

    ref = reference_forward(params, user, item)
    assert out.shape == (B, 1)
    assert bool(jnp.all(jnp.isfinite(out)))
    err = float(jnp.max(jnp.abs(out - ref)))
    assert jnp.allclose(out, ref, atol=2e-3, rtol=1e-3), err

    print("KERNEL_OK")
</pallas_src>

<mosaic_0001>
module attributes {stable_mosaic.version = 11 : i64} {
  func.func @mf_fused_kernel(%arg0: i32, %arg1: memref<1x256xi32, #tpu.memory_space<vmem>>, %arg2: memref<1x256xi32, #tpu.memory_space<vmem>>, %arg3: memref<32x16xbf16, #tpu.memory_space<vmem>>, %arg4: memref<32x16xbf16, #tpu.memory_space<vmem>>, %arg5: memref<32x1xf32, #tpu.memory_space<vmem>>, %arg6: memref<16x32xbf16, #tpu.memory_space<vmem>>, %arg7: memref<16x1xf32, #tpu.memory_space<vmem>>, %arg8: memref<16x1xf32, #tpu.memory_space<vmem>>, %arg9: memref<1x1xf32, #tpu.memory_space<vmem>>, %arg10: memref<1x256xf32, #tpu.memory_space<vmem>>) attributes {dimension_semantics = [#tpu.dimension_semantics<parallel>], iteration_bounds = array<i64: 2>, scalar_prefetch = 0 : i64, scratch_operands = 0 : i64, tpu.core_type = #tpu.core_type<tc>, window_params = [{transform_indices = @transform_0, window_bounds = array<i64: 1, 256>}, {transform_indices = @transform_1, window_bounds = array<i64: 1, 256>}, {pipeline_mode = #tpu.pipeline_mode<synchronous>, transform_indices = @transform_2, window_bounds = array<i64: 32, 16>}, {pipeline_mode = #tpu.pipeline_mode<synchronous>, transform_indices = @transform_3, window_bounds = array<i64: 32, 16>}, {pipeline_mode = #tpu.pipeline_mode<synchronous>, transform_indices = @transform_4, window_bounds = array<i64: 32, 1>}, {pipeline_mode = #tpu.pipeline_mode<synchronous>, transform_indices = @transform_5, window_bounds = array<i64: 16, 32>}, {pipeline_mode = #tpu.pipeline_mode<synchronous>, transform_indices = @transform_6, window_bounds = array<i64: 16, 1>}, {pipeline_mode = #tpu.pipeline_mode<synchronous>, transform_indices = @transform_7, window_bounds = array<i64: 16, 1>}, {pipeline_mode = #tpu.pipeline_mode<synchronous>, transform_indices = @transform_8, window_bounds = array<i64: 1, 1>}, {transform_indices = @transform_9, window_bounds = array<i64: 1, 256>}]} {
    %c0 = arith.constant 0 : index
    %c0_0 = arith.constant 0 : index
    %0 = vector.load %arg1[%c0, %c0_0] : memref<1x256xi32, #tpu.memory_space<vmem>>, vector<1x256xi32>
    %c0_1 = arith.constant 0 : index
    %c0_2 = arith.constant 0 : index
    %1 = vector.load %arg2[%c0_1, %c0_2] : memref<1x256xi32, #tpu.memory_space<vmem>>, vector<1x256xi32>
    %2 = tpu.iota {dimensions = array<i32: 0>} : vector<16x256xi32>
    %3 = tpu.iota {dimensions = array<i32: 0>} : vector<16x256xi32>
    %4 = vector.broadcast %0 : vector<1x256xi32> to vector<16x256xi32>
    %5 = arith.cmpi eq, %2, %4 : vector<16x256xi32>
    %6 = arith.extui %5 : vector<16x256xi1> to vector<16x256xi32>
    %7 = arith.sitofp %6 : vector<16x256xi32> to vector<16x256xf32>
    %8 = arith.truncf %7 : vector<16x256xf32> to vector<16x256xbf16>
    %9 = vector.broadcast %1 : vector<1x256xi32> to vector<16x256xi32>
    %10 = arith.cmpi eq, %3, %9 : vector<16x256xi32>
    %11 = arith.extui %10 : vector<16x256xi1> to vector<16x256xi32>
    %12 = arith.sitofp %11 : vector<16x256xi32> to vector<16x256xf32>
    %13 = arith.truncf %12 : vector<16x256xf32> to vector<16x256xbf16>
    %c0_3 = arith.constant 0 : index
    %c0_4 = arith.constant 0 : index
    %14 = vector.load %arg3[%c0_3, %c0_4] : memref<32x16xbf16, #tpu.memory_space<vmem>>, vector<32x16xbf16>
    %cst = arith.constant dense<0.000000e+00> : vector<32x256xf32>
    %15 = tpu.matmul %14, %8, %cst {dimension_numbers = #tpu.dot_dimension_numbers<[1], [0], [0], [1], [0, 0, 1, 1], [], []>} : vector<32x16xbf16>, vector<16x256xbf16>, vector<32x256xf32> -> vector<32x256xf32>
    %c0_5 = arith.constant 0 : index
    %c0_6 = arith.constant 0 : index
    %16 = vector.load %arg4[%c0_5, %c0_6] : memref<32x16xbf16, #tpu.memory_space<vmem>>, vector<32x16xbf16>
    %cst_7 = arith.constant dense<0.000000e+00> : vector<32x256xf32>
    %17 = tpu.matmul %16, %13, %cst_7 {dimension_numbers = #tpu.dot_dimension_numbers<[1], [0], [0], [1], [0, 0, 1, 1], [], []>} : vector<32x16xbf16>, vector<16x256xbf16>, vector<32x256xf32> -> vector<32x256xf32>
    %18 = arith.addf %15, %17 : vector<32x256xf32>
    %c0_8 = arith.constant 0 : index
    %c0_9 = arith.constant 0 : index
    %19 = vector.load %arg5[%c0_8, %c0_9] : memref<32x1xf32, #tpu.memory_space<vmem>>, vector<32x1xf32>
    %20 = vector.broadcast %19 : vector<32x1xf32> to vector<32x256xf32>
    %21 = arith.addf %18, %20 : vector<32x256xf32>
    %cst_10 = arith.constant 0.000000e+00 : f32
    %22 = vector.broadcast %cst_10 : f32 to vector<32x256xf32>
    %23 = arith.maximumf %21, %22 : vector<32x256xf32>
    %c0_11 = arith.constant 0 : index
    %c0_12 = arith.constant 0 : index
    %24 = vector.load %arg6[%c0_11, %c0_12] : memref<16x32xbf16, #tpu.memory_space<vmem>>, vector<16x32xbf16>
    %25 = arith.truncf %23 : vector<32x256xf32> to vector<32x256xbf16>
    %cst_13 = arith.constant dense<0.000000e+00> : vector<16x256xf32>
    %26 = tpu.matmul %24, %25, %cst_13 {dimension_numbers = #tpu.dot_dimension_numbers<[1], [0], [0], [1], [0, 0, 1, 1], [], []>} : vector<16x32xbf16>, vector<32x256xbf16>, vector<16x256xf32> -> vector<16x256xf32>
    %c0_14 = arith.constant 0 : index
    %c0_15 = arith.constant 0 : index
    %27 = vector.load %arg7[%c0_14, %c0_15] : memref<16x1xf32, #tpu.memory_space<vmem>>, vector<16x1xf32>
    %28 = vector.broadcast %27 : vector<16x1xf32> to vector<16x256xf32>
    %29 = arith.addf %26, %28 : vector<16x256xf32>
    %cst_16 = arith.constant 0.000000e+00 : f32
    %30 = vector.broadcast %cst_16 : f32 to vector<16x256xf32>
    %31 = arith.maximumf %29, %30 : vector<16x256xf32>
    %c0_17 = arith.constant 0 : index
    %c0_18 = arith.constant 0 : index
    %32 = vector.load %arg8[%c0_17, %c0_18] : memref<16x1xf32, #tpu.memory_space<vmem>>, vector<16x1xf32>
    %33 = vector.broadcast %32 : vector<16x1xf32> to vector<16x256xf32>
    %34 = arith.mulf %31, %33 : vector<16x256xf32>
    %cst_19 = arith.constant dense<0.000000e+00> : vector<256xf32>
    %35 = vector.multi_reduction <add>, %34, %cst_19 [0] : vector<16x256xf32> to vector<256xf32>
    %36 = vector.shape_cast %35 : vector<256xf32> to vector<1x256xf32>
    %c0_20 = arith.constant 0 : index
    %c0_21 = arith.constant 0 : index
    %37 = vector.load %arg9[%c0_20, %c0_21] : memref<1x1xf32, #tpu.memory_space<vmem>>, vector<1x1xf32>
    %38 = vector.broadcast %37 : vector<1x1xf32> to vector<1x256xf32>
    %39 = arith.addf %36, %38 : vector<1x256xf32>
    %40 = arith.negf %39 : vector<1x256xf32>
    %41 = math.exp %40 : vector<1x256xf32>
    %cst_22 = arith.constant 1.000000e+00 : f32
    %42 = vector.broadcast %cst_22 : f32 to vector<1x256xf32>
    %43 = arith.addf %42, %41 : vector<1x256xf32>
    %44 = arith.divf %42, %43 : vector<1x256xf32>
    %cst_23 = arith.constant 5.000000e+00 : f32
    %45 = vector.broadcast %cst_23 : f32 to vector<1x256xf32>
    %46 = arith.mulf %44, %45 : vector<1x256xf32>
    %c0_24 = arith.constant 0 : index
    %c0_25 = arith.constant 0 : index
    %47 = vector.load %arg10[%c0_24, %c0_25] : memref<1x256xf32, #tpu.memory_space<vmem>>, vector<1x256xf32>
    tpu.vector_store %arg10[%c0_24, %c0_25], %46 {strides = array<i32>} : memref<1x256xf32, #tpu.memory_space<vmem>>, vector<1x256xf32>,
    return
  }
  func.func @transform_0(%arg0: i32) -> (i32, i32) {
    %c0_i32 = arith.constant 0 : i32
    %c0_i32_0 = arith.constant 0 : i32
    return %c0_i32, %arg0 : i32, i32
  }
  func.func @transform_1(%arg0: i32) -> (i32, i32) {
    %c0_i32 = arith.constant 0 : i32
    %c0_i32_0 = arith.constant 0 : i32
    return %c0_i32, %arg0 : i32, i32
  }
  func.func @transform_2(%arg0: i32) -> (i32, i32) {
    %c0_i32 = arith.constant 0 : i32
    %c0_i32_0 = arith.constant 0 : i32
    %c0_i32_1 = arith.constant 0 : i32
    return %c0_i32, %c0_i32_0 : i32, i32
  }
  func.func @transform_3(%arg0: i32) -> (i32, i32) {
    %c0_i32 = arith.constant 0 : i32
    %c0_i32_0 = arith.constant 0 : i32
    %c0_i32_1 = arith.constant 0 : i32
    return %c0_i32, %c0_i32_0 : i32, i32
  }
  func.func @transform_4(%arg0: i32) -> (i32, i32) {
    %c0_i32 = arith.constant 0 : i32
    %c0_i32_0 = arith.constant 0 : i32
    %c0_i32_1 = arith.constant 0 : i32
    return %c0_i32, %c0_i32_0 : i32, i32
  }
  func.func @transform_5(%arg0: i32) -> (i32, i32) {
    %c0_i32 = arith.constant 0 : i32
    %c0_i32_0 = arith.constant 0 : i32
    %c0_i32_1 = arith.constant 0 : i32
    return %c0_i32, %c0_i32_0 : i32, i32
  }
  func.func @transform_6(%arg0: i32) -> (i32, i32) {
    %c0_i32 = arith.constant 0 : i32
    %c0_i32_0 = arith.constant 0 : i32
    %c0_i32_1 = arith.constant 0 : i32
    return %c0_i32, %c0_i32_0 : i32, i32
  }
  func.func @transform_7(%arg0: i32) -> (i32, i32) {
    %c0_i32 = arith.constant 0 : i32
    %c0_i32_0 = arith.constant 0 : i32
    %c0_i32_1 = arith.constant 0 : i32
    return %c0_i32, %c0_i32_0 : i32, i32
  }
  func.func @transform_8(%arg0: i32) -> (i32, i32) {
    %c0_i32 = arith.constant 0 : i32
    %c0_i32_0 = arith.constant 0 : i32
    %c0_i32_1 = arith.constant 0 : i32
    return %c0_i32, %c0_i32_0 : i32, i32
  }
  func.func @transform_9(%arg0: i32) -> (i32, i32) {
    %c0_i32 = arith.constant 0 : i32
    %c0_i32_0 = arith.constant 0 : i32
    return %c0_i32, %arg0 : i32, i32
  }
}

</mosaic_0001>

<bundles_post_ra>
// kernel: tpu_custom_call.1
= control target key start
LH: loop header
LB: loop body
LE: loop exit
PB: predicated region body
PF: predicated region fallthrough
CT: control target
= control target key end

     0   :  { %s1195_s0 = inlined_call_operand.vmem [shape: s32[1,512], index: 0, kind: input, shape index: {}]   ;;  %s1196_s1 = inlined_call_operand.vmem [shape: s32[1,512], index: 1, kind: input, shape index: {}]   ;;  %s1197_s2 = inlined_call_operand.vmem [shape: bf16[32,16], index: 2, kind: input, shape index: {}]   ;;  %s1198_s3 = inlined_call_operand.vmem [shape: bf16[32,16], index: 3, kind: input, shape index: {}]   ;;  %s1199_s4 = inlined_call_operand.vmem [shape: f32[32,1], index: 4, kind: input, shape index: {}]   ;;  %s1200_s5 = inlined_call_operand.vmem [shape: bf16[16,32], index: 5, kind: input, shape index: {}]   ;;  %s1201_s6 = inlined_call_operand.vmem [shape: f32[16,1], index: 6, kind: input, shape index: {}]   ;;  %s1202_s7 = inlined_call_operand.vmem [shape: f32[16,1], index: 7, kind: input, shape index: {}]   ;;  %s1203_s8 = inlined_call_operand.<no memory space> [shape: f32[1,1], index: 8, kind: input, shape index: {}]   ;;  %s1204_s9 = inlined_call_operand.hbm [shape: f32[1,512], index: 9, kind: output, shape index: {}]  }
   0x1   :  { %v14_v0 = vstv %s1203_s8 }
   0x2   :  { %15 = vst [vmem:[#allocation2] sm:$0x1] %v14_v0 }
   0x3   :  { %16 = vsyncpa [#allocation4], 0 }
   0x4   :  { %18 = vsyncpa [#allocation4 + $0x1], 0  ;;  %s1039_s11 = smov 0   ;;  %s1041_s12 = smov 0  }
   0x5   :  { %s1043_s13 = smov 0   ;;  %s1045_s14 = smov 0  }
   0x6 LB: > { %s1060_s8 = sadd.s32 4294967295, %s980_s14   ;;  %s822_s15 = sadd.s32 4294967294, %s980_s14   ;;  %s980_s14 = sphi %s1045_s14, %s1210_s14   ;;  %s976_s13 = sphi %s1043_s13, %s1209_s13   ;;  %s972_s12 = sphi %s1041_s12, %s1208_s12   ;;  %s968_s11 = sphi %s1039_s11, %s1207_s11  }
   0x7   : > { %s1064_s16 = sadd.s32 1, %s980_s14   ;;  %s230_s17 = sadd.s32 1, %s976_s13 }
   0x8   : > { %s227_s18 = ssub.s32 %s980_s14, %s1064_s16  ;;  %p240_p0 = scmp.ne.s32.totalorder %s976_s13, %s972_s12 }
   0x9   : > { %p228_p1 = scmp.eq.s32.totalorder %s227_s18, 0  ;;  %p241_p2 = scmp.eq.s32.totalorder %s1060_s8, 1 }
   0xa   : > { %p246_p3 = scmp.ne.s32.totalorder %s972_s12, %s968_s11  ;;  %p247_p4 = scmp.eq.s32.totalorder %s822_s15, 1 }
   0xb   : > { %s1075_s19 = scalar_select %p228_p1, %s976_s13, %s230_s17  }
   0xc   : > { %p1077_p5 = por %p241_p2, %p240_p0  ;;  %p1081_p6 = por %p247_p4, %p246_p3 }
   0xd   : > { %p825_p7 = scmp.ge.s32.totalorder %s980_s14, 1  ;;  %p302_p8 = scmp.lt.s32.totalorder %s980_s14, 3 }
   0xf   : > { %p303_p9 = pnand %p825_p7, %p302_p8 }
  0x10   : > { %s827_s22 = sshll.u32 (!%p303_p9), %s1060_s8, 1  ;;  %s338_s29 = sand.u32 (!%p303_p9), 1, %s972_s12  }
  0x11   : > { %306 = sbr.rel (%p303_p9) target bundleno = 535 (0x217), region = 56  ;;  %p342_p10 = scmp.lt.s32.totalorder (!%p303_p9), %s827_s22, 3 }
  0x12   : > { %s862_s10 = sshll.u32 (!%p303_p9), %s1060_s8, 5  ;;  %s743_s24 = scalar_lea.sflag (!%p303_p9), [#allocation4], %s338_s29 }
  0x13   : > { %s985_s26 = smov (!%p303_p9), [#allocation3]  }
  0x14   : > { %s924_s8 = sshll.u32 (!%p303_p9), %s985_s26, 4  ;;  %s925_s8 = int_to_ptr.vmem [resolvable:$false] %s924_s8 }
  0x16   : > { %v355_v1 = vlaneseq  ;;  %v982_v2 = vmov 0   ;;  %s1212_s22 = smov (!%p342_p10, %s827_s22), 3  ;;  %v551_v6 = vld [vmem:[%s1199_s4 + $0x10] sm:$0xff]  ;;  %v549_v8 = vld [vmem:[%s1199_s4] sm:$0xff]  ;;  %v552_v11 = vld [vmem:[%s1199_s4 + $0x18] sm:$0xff]  ;;  %vm420_vm12 = vcmask 130048  }
  0x17   : > { %459 = vmatprep.mubr.bf16.mxu0 %v982_v2  ;;  %528 = vmatprep.mubr.bf16.mxu1 %v982_v2  ;;  %s349_s27 = scalar_lea.vmem %s1196_s1, %s1212_s22  ;;  %s344_s30 = scalar_lea.vmem %s1195_s0, %s1212_s22  ;;  %v550_v16 = vld [vmem:[%s1199_s4 + $0x8] sm:$0xff]  ;;  %v595_v17 = vld [vmem:[%s1201_s6] sm:$0xff]  ;;  %v983_v18 = vmov 1.0|1.0   ;;  %vm612_vm13 = vcmask 261120  }
  0x18   : > { %v1091_v3 = vshrl.u32 %v355_v1, 7  ;;  %905 = vset.pattern.permute.xlu0 %v982_v2  ;;  %906 = vset.pattern.permute.xlu1 %v982_v2  ;;  %v354_v9 = vld [vmem:[%s349_s27] sm:$0x3]  ;;  %v596_v19 = vld [vmem:[%s1201_s6 + $0x8] sm:$0xff]  ;;  %vm739_vm14 = vcmp.lt.s32.totalorder %v355_v1, 256  ;;  %s755_s22 = scalar_lea.hbm %s1204_s9, %s862_s10  ;;  %s926_s27 = scalar_lea.vmem %s925_s8, 64 }
  0x19   : > { %565 = vperm.xlu0 %905, %v551_v6   ;;  %v353_v10 = vld [vmem:[%s344_s30] sm:$0x3]  ;;  %555 = vperm.xlu1 %906, %v549_v8   ;;  %v664_v23 = vld [vmem:[%s1202_s7 + $0x8] sm:$0xff]  ;;  %s826_s30 = sshll.u32 %s338_s29, 1 }
  0x1a   : > { %v364_v4 = vsub.s32 1, %v1091_v3  ;;  %v1097_v5 = vsub.s32 0, %v1091_v3  ;;  %v357_v7 = vadd.s32 8, %v1091_v3  ;;  %v907_v20 = vld [vmem:[%s1198_s3] sm:$0xff]   ;;  %v909_v25 = vld [vmem:[%s1198_s3 + $0x8] sm:$0xff]   ;;  %s340_s15 = scalar_lea.vmem [#allocation3], %s826_s30 }
  0x1b   : > { %v908_v21 = vld [vmem:[%s1197_s2] sm:$0xff]   ;;  %v910_v26 = vld [vmem:[%s1197_s2 + $0x8] sm:$0xff]   ;;  %s757_s17 = sshll.u32 %s340_s15, 4  ;;  %s758_s17 = int_to_ptr.vmem [resolvable:$true] %s757_s17 }
  0x1c   : > { %v387_v12 = vrot.slane %v354_v9, %v364_v4  ;;  %v365_v13 = vrot.slane %v353_v10, %v364_v4  ;;  %v383_v14 = vrot.slane %v354_v9, %v1097_v5  ;;  %v361_v15 = vrot.slane %v353_v10, %v1097_v5  ;;  %v663_v22 = vld [vmem:[%s1202_s7] sm:$0xff]  ;;  %s920_s25 = scalar_lea.vmem %s758_s17, 32  ;;  %p927_p0 = scmp.lt.s32.totalorder %s758_s17, %s925_s8 }
  0x1d   : > { %570 = vperm.xlu0 %905, %v552_v11   ;;  %560 = vperm.xlu1 %906, %v550_v16   ;;  %v693_v24 = vld [vmem:[#allocation2] sm:$0x1]  ;;  %p921_p11 = scmp.ne.s32.totalorder %s758_s17, %s920_s25  ;;  %p928_p1 = scmp.lt.s32.totalorder %s926_s27, %s920_s25 }
  0x1e   : > { %vm389_vm0 = vcmp.eq.s32.totalorder %v1091_v3, %v387_v12  ;;  %vm391_vm1 = vcmp.eq.s32.totalorder %v357_v7, %v387_v12  ;;  %vm367_vm2 = vcmp.eq.s32.totalorder %v1091_v3, %v365_v13  ;;  %vm369_vm3 = vcmp.eq.s32.totalorder %v357_v7, %v365_v13 }
  0x1f   : > { %vm839_vm4 = vmpackc.low %vm391_vm1, %vm389_vm0  ;;  %vm388_vm5 = vcmp.eq.s32.totalorder %v1091_v3, %v383_v14  ;;  %vm390_vm6 = vcmp.eq.s32.totalorder %v357_v7, %v383_v14  ;;  %vm366_vm7 = vcmp.eq.s32.totalorder %v1091_v3, %v361_v15  ;;  %vm368_vm8 = vcmp.eq.s32.totalorder %v357_v7, %v361_v15  ;;  %v911_v14 = vld [vmem:[%s1200_s5] sm:$0xff]   ;;  %p922_p12 = pnand %p921_p11, %p1077_p5  ;;  %p929_p2 = por %p928_p1, %p927_p0 }
  0x20   : > { %840 = vmatprep.subr.msk.bf16.mxu0 %vm839_vm4, %v983_v18  ;;  %vm847_vm9 = vmpackc.low %vm369_vm3, %vm367_vm2 }
  0x21   : > { %848 = vmatprep.subr.msk.bf16.mxu1 %vm847_vm9, %v983_v18  ;;  %vm841_vm10 = vmpackc.low %vm390_vm6, %vm388_vm5  ;;  %599 = vperm.xlu0 %905, %v595_v17   ;;  %p923_p13 = pneg %p922_p12 }
  0x22   : > { %842 = vmatpush1.bf16.msk.msra.mxu0 %vm841_vm10, %v983_v18  ;;  %vm849_vm11 = vmpackc.low %vm368_vm8, %vm366_vm7  ;;  %604 = vperm.xlu1 %906, %v596_v19  }
  0x23   : > { %850 = vmatpush1.bf16.msk.msra.mxu1 %vm849_vm11, %v983_v18  ;;  %p930_p3 = pnand %p929_p2, %p923_p13 }
  0x25   : > { %843 = vmatmul.mubr.msk.bf16.vlgmr.msra.gmra.mxu0 %vm420_vm12, %v907_v20  ;;  %667 = vperm.xlu0 %905, %v663_v22  }
  0x26   : > { %851 = vmatmul.mubr.msk.bf16.vlgmr.msra.gmra.mxu1 %vm420_vm12, %v908_v21  ;;  %469 = vmatprep.mubr.bf16.mxu0 %v982_v2 }
  0x27   : > { %538 = vmatprep.mubr.bf16.mxu1 %v982_v2  ;;  %672 = vperm.xlu1 %906, %v664_v23  }
  0x29   : > { %696 = vperm.xlu0 %905, %v693_v24  }
  0x2d   : > { %844 = vmatmul.mubr.msk.bf16.gmra.mxu0 %vm420_vm12, %v909_v25 }
  0x2e   : > { %852 = vmatmul.mubr.msk.bf16.gmra.mxu1 %vm420_vm12, %v910_v26  ;;  %648 = vmatprep.mubr.bf16.mxu0 %v982_v2 }
  0x94   : > { %v566_v35 = vpop.permute.xlu0 %565  ;;  %v556_v37 = vpop.permute.xlu1 %555 }
  0x98   : > { %v571_v46 = vpop.permute.xlu0 %570  ;;  %v561_v51 = vpop.permute.xlu1 %560 }
  0x9c   : > { %v600_v15 = vpop.permute.xlu0 %599 }
  0x9d   : > { %v605_v18 = vpop.permute.xlu1 %604 }
  0xe5   : > { %v461_v27 = vpop.f32.mrf.mxu0 }
  0xe6   : > { %v530_v28 = vpop.f32.mrf.mxu1 }
  0xe7   : > { %v463_v29 = vpop.f32.mrf.mxu0  ;;  %v531_v57 = vadd.f32 %v530_v28, %v461_v27  ;;  %v668_v28 = vpop.permute.xlu0 %667 }
  0xe8   : > { %v532_v30 = vpop.f32.mrf.mxu1 }
  0xe9   : > { %v465_v31 = vpop.f32.mrf.mxu0  ;;  %v533_v47 = vadd.f32 %v532_v30, %v463_v29  ;;  %v573_v4 = vadd.f32 %v556_v37, %v531_v57  ;;  %v673_v29 = vpop.permute.xlu1 %672 }
  0xea   : > { %v534_v32 = vpop.f32.mrf.mxu1 }
  0xeb   : > { %v467_v33 = vpop.f32.mrf.mxu0  ;;  %v535_v50 = vadd.f32 %v534_v32, %v465_v31  ;;  %v574_v59 = vadd.f32 %v556_v37, %v533_v47  ;;  %v581_v12 = vmax.f32 %v573_v4, 0.0 }
  0xec   : > { %v536_v34 = vpop.f32.mrf.mxu1 }
  0xed   : > { %v471_v36 = vpop.f32.mrf.mxu0  ;;  %v537_v41 = vadd.f32 %v536_v34, %v467_v33  ;;  %v575_v61 = vadd.f32 %v561_v51, %v535_v50  ;;  %v582_v7 = vmax.f32 %v574_v59, 0.0  ;;  %v984_v59 = vmov 1966171168  }
  0xee   : > { %v540_v38 = vpop.f32.mrf.mxu1 }
  0xef   : > { %v473_v39 = vpop.f32.mrf.mxu0  ;;  %v541_v44 = vadd.f32 %v540_v38, %v471_v36  ;;  %v576_v53 = vadd.f32 %v561_v51, %v537_v41  ;;  %v583_v9 = vmax.f32 %v575_v61, 0.0 }
  0xf0   : > { %v542_v40 = vpop.f32.mrf.mxu1 }
  0xf1   : > { %v543_v42 = vadd.f32 %v542_v40, %v473_v39  ;;  %v475_v43 = vpop.f32.mrf.mxu0  ;;  %v577_v58 = vadd.f32 %v566_v35, %v541_v44  ;;  %v584_v63 = vmax.f32 %v576_v53, 0.0  ;;  %v591_v13 = vpack.c.bf16 %v583_v9, %v581_v12  ;;  %v697_v44 = vpop.permute.xlu0 %696 }
  0xf2   : > { %v544_v45 = vpop.f32.mrf.mxu1  ;;  %v702_v47 = vrot.slane %v697_v44, %v1097_v5 }
  0xf3   : > { %v545_v48 = vadd.f32 %v544_v45, %v475_v43  ;;  %v477_v49 = vpop.f32.mrf.mxu0  ;;  %v578_v54 = vadd.f32 %v566_v35, %v543_v42  ;;  %v585_v6 = vmax.f32 %v577_v58, 0.0  ;;  %v592_v11 = vpack.c.bf16 %v584_v63, %v582_v7 }
  0xf4   : > { %v546_v52 = vpop.f32.mrf.mxu1 }
  0xf5   : > { %v579_v55 = vadd.f32 %v571_v46, %v545_v48  ;;  %v547_v56 = vadd.f32 %v546_v52, %v477_v49  ;;  %v586_v0 = vmax.f32 %v578_v54, 0.0 }
  0xf7   : > { %v580_v60 = vadd.f32 %v571_v46, %v547_v56  ;;  %v587_v62 = vmax.f32 %v579_v55, 0.0 }
  0xf9   : > { %v588_v2 = vmax.f32 %v580_v60, 0.0  ;;  %v593_v10 = vpack.c.bf16 %v587_v62, %v585_v6  ;;  %v723_v60 = vunpack.c.l.s4 %v984_v59 }
  0xfb   : > { %v594_v8 = vpack.c.bf16 %v588_v2, %v586_v0  ;;  %v724_v5 = vunpack.c.0.s8 %v723_v60 }
  0xfd   : > { %628 = vmatprep.subr.bf16.mxu0 %v594_v8  ;;  %v727_v2 = vsub.s32 %v724_v5, %v1091_v3 }
  0xfe   : > { %629 = vmatpush1.bf16.msra.mxu0 %v593_v10 }
  0xff   : > { %630 = vmatprep.subr.bf16.mxu0 %v592_v11 }
 0x102   : > { %631 = vmatpush1.bf16.msra.mxu0 %v591_v13 }
 0x105   : > { %854 = vmatmul.mubr.msk.bf16.vlgmr.msra.gmra.mxu0 %vm612_vm13, %v911_v14 }
 0x1c5   : > { %v650_v16 = vpop.f32.mrf.mxu0 }
 0x1c6   : > { %v651_v17 = vadd.f32 %v650_v16, %v600_v15 }
 0x1c7   : > { %v652_v19 = vpop.f32.mrf.mxu0 }
 0x1c8   : > { %v653_v20 = vadd.f32 %v652_v19, %v600_v15  ;;  %v659_v22 = vmax.f32 %v651_v17, 0.0 }
 0x1c9   : > { %v654_v21 = vpop.f32.mrf.mxu0 }
 0x1ca   : > { %v655_v23 = vadd.f32 %v654_v21, %v605_v18  ;;  %v660_v25 = vmax.f32 %v653_v20, 0.0  ;;  %v675_v30 = vmul.f32 %v668_v28, %v659_v22 }
 0x1cb   : > { %v656_v24 = vpop.f32.mrf.mxu0 }
 0x1cc   : > { %v661_v26 = vmax.f32 %v655_v23, 0.0  ;;  %v657_v27 = vadd.f32 %v656_v24, %v605_v18  ;;  %v676_v33 = vmul.f32 %v668_v28, %v660_v25 }
 0x1ce   : > { %v677_v31 = vmul.f32 %v673_v29, %v661_v26  ;;  %v662_v32 = vmax.f32 %v657_v27, 0.0 }
 0x1d0   : > { %v679_v34 = vadd.f32 %v677_v31, %v675_v30  ;;  %v678_v35 = vmul.f32 %v673_v29, %v662_v32 }
 0x1d2   : > { %v680_v36 = vrot.slane %v679_v34, 4  ;;  %v686_v37 = vadd.f32 %v678_v35, %v676_v33 }
 0x1d4   : > { %v681_v38 = vadd.f32 %v680_v36, %v679_v34  ;;  %v687_v39 = vrot.slane %v686_v37, 4 }
 0x1d6   : > { %v682_v40 = vrot.slane %v681_v38, 2  ;;  %v688_v41 = vadd.f32 %v687_v39, %v686_v37 }
 0x1d8   : > { %v683_v42 = vadd.f32 %v682_v40, %v681_v38  ;;  %v689_v43 = vrot.slane %v688_v41, 2 }
 0x1da   : > { %v684_v45 = vrot.slane %v683_v42, 1  ;;  %v690_v46 = vadd.f32 %v689_v43, %v688_v41 }
 0x1dc   : > { %v685_v48 = vadd.f32 %v684_v45, %v683_v42  ;;  %v691_v49 = vrot.slane %v690_v46, 1 }
 0x1de   : > { %v703_v50 = vadd.f32 %v702_v47, %v685_v48  ;;  %v692_v51 = vadd.f32 %v691_v49, %v690_v46 }
 0x1e0   : > { %v855_v52 = vmul.f32 -1.442695, %v703_v50  ;;  %v704_v53 = vadd.f32 %v702_v47, %v692_v51 }
 0x1e2   : > { %912 = vpow2.f32 %v855_v52  ;;  %v856_v54 = vmul.f32 -1.442695, %v704_v53 }
 0x1e4   : > { %914 = vpow2.f32 %v856_v54 }
 0x1ef   : > { %v913_v55 = vpop.eup %912 }
 0x1f0   : > { %v711_v56 = vadd.f32 1.0, %v913_v55 }
 0x1f1   : > { %v915_v57 = vpop.eup %914 }
 0x1f2   : > { %v712_v58 = vadd.f32 1.0, %v915_v57  ;;  %916 = vrcp.f32 %v711_v56 }
 0x1f4   : > { %918 = vrcp.f32 %v712_v58 }
 0x1ff   : > { %v917_v61 = vpop.eup %916 }
 0x200   : > { %v717_v63 = vmul.f32 5.0, %v917_v61 }
 0x201   : > { %v919_v62 = vpop.eup %918 }
 0x202   : > { %v718_v0 = vmul.f32 5.0, %v919_v62 }
 0x204   : > { %v721_v4 = vcombine.low %v717_v63, %v718_v0 }
 0x206   : > { %v728_v6 = vrot.slane %v721_v4, %v727_v2 }
 0x208   : > { %v735_v7 = vrot.slane %v728_v6, %v727_v2 }
 0x20a   : > { %741 = vst.msk [vmem:[%s340_s15] sm:$0x3] %vm739_vm14, %v735_v7 }
 0x20b   : > { %933 = shalt.err (!%p930_p3)
}
 0x20c   : > { %s934_s28 = scalar_lea.hbm %s755_s22, 32  ;;  %s938_s10 = scalar_lea.hbm %s1204_s9, 64 }
 0x20d   : > { %p935_p4 = scmp.ne.s32.totalorder %s755_s22, %s934_s28  ;;  %p939_p9 = scmp.lt.s32.totalorder %s755_s22, %s1204_s9 }
 0x20e   : > { %p940_p10 = scmp.lt.s32.totalorder %s938_s10, %s934_s28 }
 0x20f   : > { %p936_p7 = pnand %p935_p4, %p1077_p5 }
 0x210   : > { %p941_p11 = por %p940_p10, %p939_p9 }
 0x211   : > { %p937_p8 = pneg %p936_p7 }
 0x213   : > { %p942_p12 = pnand %p941_p11, %p937_p8 }
 0x215   : > { %945 = shalt.err (!%p942_p12)
}
 0x216   : > { %863 = dma.vmem_to_hbm [thread:$0]  (%p1077_p5), %s758_s17, 32, %s755_s22, %s743_s24  }
 0x217 PF: > { %p869_p13 = scmp.ge.s32.totalorder %s980_s14, 2  ;;  %s769_s23 = sand.u32 1, %s968_s11  }
 0x218   : > { %s770_s25 = scalar_lea.sflag [#allocation4], %s769_s23 }
 0x219   : > { %p866_p0 = pnand %p869_p13, %p1081_p6 }
 0x21b   : > { %p867_p1 = pneg %p866_p0 }
 0x21d   : > { %963 = dma.done.wait (%p867_p1), %s770_s25, 32  }
 0x21e   : > { %965 = vsyncadd (%p867_p1), %s770_s25, 4294967264  ;;  %p21_p2 = scmp.ge.s32.totalorder %s1064_s16, 4   ;;  %s1207_s11 = smov %s972_s12 }
 0x21f   : > { %s1208_s12 = smov %s976_s13  ;;  %s1209_s13 = smov %s1075_s19 }
 0x220   : > { %s1210_s14 = smov %s1064_s16  ;;  %23 = sbr.rel (!%p21_p2) target bundleno = 6 (0x6), region = 94 }
 0x225   :  { %775 = vsyncpa [#allocation4], 1 }
 0x226   :  { %777 = vsyncpa [#allocation4 + $0x1], 1 }

</bundles_post_ra>
